<compile_context>
chip_gen: v6e
topology: v6e:2x2x1
jax: 0.10.0
libtpu: 0.0.40
codegen_flags: <defaults>
</compile_context>

<pallas_src>
import functools
import math

import jax
import jax.numpy as jnp
from jax.experimental import pallas as pl
from jax.experimental.pallas import tpu as pltpu

_EPS = 1e-6        # matches torch.nn.functional.pairwise_distance default eps
_PAD_NEG = 1e6     # pad value for `negative` rows -> padded rows contribute exactly 0


def _max_margin_kernel(a_ref, p_ref, n_ref, seg_ref, out_ref, acc_ref, *,
                       margin, fold):
    i = pl.program_id(1)             # reduction axis over row tiles
    steps = pl.num_programs(1)

    @pl.when(i == 0)
    def _():
        acc_ref[...] = jnp.zeros_like(acc_ref)

    a = a_ref[...].astype(jnp.float32)
    p = p_ref[...].astype(jnp.float32)
    n = n_ref[...].astype(jnp.float32)
    seg = seg_ref[...]               # (lanes, fold) block-diagonal 0/1, f32

    # pairwise_distance: ||x1 - x2 + eps||_2 along the feature dim.
    dp2 = (a - p + _EPS) ** 2        # (tile_n, lanes)
    dn2 = (a - n + _EPS) ** 2

    # Per-sub-row segment sums on the MXU (idle otherwise): (tile_n, fold).
    ps = jnp.dot(dp2, seg, preferred_element_type=jnp.float32)
    ns = jnp.dot(dn2, seg, preferred_element_type=jnp.float32)

    # One batched sqrt (single EUP pass over 2*fold lanes).
    dists = jnp.sqrt(jnp.concatenate([ps, ns], axis=-1))    # (tile_n, 2*fold)
    per_seg = jnp.maximum(margin + dists[:, :fold] - dists[:, fold:], 0.0)

    # Single wide VPU accumulate; padded rows were constructed to contribute 0.
    acc_ref[...] += per_seg

    @pl.when(i == steps - 1)
    def _():
        total = jnp.sum(acc_ref[...], keepdims=True)          # (1, 1)
        out_ref[...] = total[None]                            # (1, 1, 1)


def _round_up(x, m):
    return ((x + m - 1) // m) * m


def _tpu_info():
    try:
        return pltpu.get_tpu_info()
    except Exception:
        return None


def _default_num_slices():
    """2 slices only when we can confidently detect a 2-TensorCore chip (v7x)."""
    info = _tpu_info()
    if info is None:
        return 1
    for attr in ("num_tensorcores", "tensorcore_count"):
        v = getattr(info, attr, None)
        if isinstance(v, int) and v >= 1:
            return min(max(v, 1), 2)
    ver = getattr(info, "chip_version", None)
    if ver is not None and "7" in str(ver):
        return 2
    return 1


def _default_vmem(num_slices):
    mib = 1024 * 1024
    info = _tpu_info()
    phys = getattr(info, "vmem_capacity_bytes", None) if info is not None else None
    if num_slices >= 2 or phys is None or phys < 96 * mib:
        return 24 * mib, 48 * mib          # v7x-shaped (64 MiB physical per TC)
    return 48 * mib, 96 * mib              # v5e / v6e (128 MiB physical)


def max_margin_loss(anchor, positive, negative, *, margin=1.0, num_slices=None,
                    vmem_budget_bytes=None, vmem_limit_bytes=None):
    """Triplet max-margin loss. anchor/positive/negative: (N, D). Returns f32 scalar."""
    N, D = anchor.shape
    assert positive.shape == (N, D) and negative.shape == (N, D)

    if num_slices is None:
        num_slices = _default_num_slices()
    budget_default, limit_default = _default_vmem(num_slices)
    if vmem_budget_bytes is None:
        vmem_budget_bytes = budget_default
    if vmem_limit_bytes is None:
        vmem_limit_bytes = limit_default

    # Lane folding: pack `fold` consecutive rows per lane-dense row
    # (lanes = lcm(D, 128) when uncapped), so VMEM tiles / DMAs waste no lanes.
    fold = min(128 // math.gcd(D, 128), 32)
    lanes = fold * D

    # Row tile from the double-buffered VMEM budget:
    #   3 inputs x 2 buffers x lanes + accumulator (fold lanes), f32 each.
    bytes_per_row = 4 * (3 * 2 * lanes + fold)
    cap = max(8, (vmem_budget_bytes // bytes_per_row) // 8 * 8)

    folded_rows = pl.cdiv(N, fold)
    per_core = pl.cdiv(folded_rows, num_slices)
    tile_n = min(cap, max(8, _round_up(per_core, 8)))
    steps = pl.cdiv(per_core, tile_n)

    folded_rows_pad = num_slices * steps * tile_n
    n_pad = folded_rows_pad * fold

    def prep(x, pad_value):
        x = jnp.pad(x, ((0, n_pad - N), (0, 0)), constant_values=pad_value)
        return x.reshape(folded_rows_pad, lanes)

    # Padded rows: anchor/positive = 0, negative = large constant, so each padded
    # row yields relu(margin + ~0 - huge) == 0. No in-kernel mask needed.
    a_f = prep(anchor, 0)
    p_f = prep(positive, 0)
    n_f = prep(negative, _PAD_NEG)

    # Constant block-diagonal (lanes, fold) segment-sum matrix for the MXU.
    seg_mat = (jnp.arange(lanes)[:, None] // D ==
               jnp.arange(fold)[None, :]).astype(jnp.float32)

    row_spec = pl.BlockSpec((tile_n, lanes), lambda c, i: (c * steps + i, 0))
    seg_spec = pl.BlockSpec((lanes, fold), lambda c, i: (0, 0))   # resident constant

    kernel = functools.partial(_max_margin_kernel, margin=float(margin), fold=fold)

    partial_sums = pl.pallas_call(
        kernel,
        out_shape=jax.ShapeDtypeStruct((num_slices, 1, 1), jnp.float32),
        grid_spec=pltpu.PrefetchScalarGridSpec(
            num_scalar_prefetch=0,
            grid=(num_slices, steps),
            in_specs=[row_spec, row_spec, row_spec, seg_spec],
            out_specs=pl.BlockSpec((1, 1, 1), lambda c, i: (c, 0, 0)),
            scratch_shapes=[pltpu.VMEM((tile_n, fold), jnp.float32)],
        ),
        compiler_params=pltpu.CompilerParams(
            # TODO(synk): on v7x verify both TCs are active; if not, switch the
            # leading axis to pltpu.CORE_PARALLEL / pl.core_map.
            dimension_semantics=("parallel", "arbitrary"),
            vmem_limit_bytes=vmem_limit_bytes,
        ),
    )(a_f, p_f, n_f, seg_mat)

    return jnp.sum(partial_sums) / jnp.float32(N)


def _reference(anchor, positive, negative, margin):
    a = anchor.astype(jnp.float32)
    p = positive.astype(jnp.float32)
    n = negative.astype(jnp.float32)
    pos_d = jnp.sqrt(jnp.sum((a - p + _EPS) ** 2, axis=-1))
    neg_d = jnp.sqrt(jnp.sum((a - n + _EPS) ** 2, axis=-1))
    return jnp.mean(jnp.maximum(margin + pos_d - neg_d, 0.0))


if __name__ == "__main__":
    key = jax.random.PRNGKey(0)
    ks = jax.random.split(key, 12)

    # 1) Primary demo: 16 samples, 32-dim embeddings (fold=4, lanes=128).
    N, D = 16, 32
    anchor = jax.random.normal(ks[0], (N, D), dtype=jnp.float32)
    positive = jax.random.normal(ks[1], (N, D), dtype=jnp.float32)
    negative = jax.random.normal(ks[2], (N, D), dtype=jnp.float32)
    loss = max_margin_loss(anchor, positive, negative, margin=1.0)
    jax.block_until_ready(loss)
    ref = _reference(anchor, positive, negative, 1.0)
    assert jnp.allclose(loss, ref, rtol=1e-4, atol=1e-4), (loss, ref)

    # 2) Ragged N + D=48 (fold=8, lanes=384; exercises padding handling).
    N2, D2 = 13, 48
    a2 = jax.random.normal(ks[3], (N2, D2), dtype=jnp.float32)
    p2 = jax.random.normal(ks[4], (N2, D2), dtype=jnp.float32)
    n2 = jax.random.normal(ks[5], (N2, D2), dtype=jnp.float32)
    loss2 = max_margin_loss(a2, p2, n2, margin=0.5)
    jax.block_until_ready(loss2)
    ref2 = _reference(a2, p2, n2, 0.5)
    assert jnp.allclose(loss2, ref2, rtol=1e-4, atol=1e-4), (loss2, ref2)

    # 3) Multi-step accumulation path (tiny forced VMEM budget -> steps > 1).
    N3, D3 = 96, 256
    a3 = jax.random.normal(ks[6], (N3, D3), dtype=jnp.float32)
    p3 = jax.random.normal(ks[7], (N3, D3), dtype=jnp.float32)
    n3 = jax.random.normal(ks[8], (N3, D3), dtype=jnp.float32)
    loss3 = max_margin_loss(a3, p3, n3, margin=1.0, num_slices=1,
                            vmem_budget_bytes=192 * 1024,
                            vmem_limit_bytes=32 * 1024 * 1024)
    jax.block_until_ready(loss3)
    ref3 = _reference(a3, p3, n3, 1.0)
    assert jnp.allclose(loss3, ref3, rtol=1e-4, atol=1e-4), (loss3, ref3)

    # 4) bfloat16 inputs passed through (kernel upcasts in-register).
    N4, D4 = 32, 32
    a4 = jax.random.normal(ks[9], (N4, D4), dtype=jnp.bfloat16)
    p4 = jax.random.normal(ks[10], (N4, D4), dtype=jnp.bfloat16)
    n4 = jax.random.normal(ks[11], (N4, D4), dtype=jnp.bfloat16)
    loss4 = max_margin_loss(a4, p4, n4, margin=1.0)
    jax.block_until_ready(loss4)
    ref4 = _reference(a4, p4, n4, 1.0)
    assert jnp.allclose(loss4, ref4, rtol=1e-4, atol=1e-4), (loss4, ref4)

    print("KERNEL_OK")
</pallas_src>

<mosaic_0001>
module attributes {stable_mosaic.version = 11 : i64} {
  func.func @_max_margin_kernel(%arg0: i32, %arg1: i32, %arg2: memref<8x128xf32, #tpu.memory_space<vmem>>, %arg3: memref<8x128xf32, #tpu.memory_space<vmem>>, %arg4: memref<8x128xf32, #tpu.memory_space<vmem>>, %arg5: memref<128x4xf32, #tpu.memory_space<vmem>>, %arg6: memref<1x1x1xf32, #tpu.memory_space<vmem>>, %arg7: memref<8x4xf32, #tpu.memory_space<vmem>>) attributes {dimension_semantics = [#tpu.dimension_semantics<parallel>, #tpu.dimension_semantics<arbitrary>], iteration_bounds = array<i64: 1, 1>, scalar_prefetch = 0 : i64, scratch_operands = 1 : i64, tpu.core_type = #tpu.core_type<tc>, window_params = [{transform_indices = @transform_0, window_bounds = array<i64: 8, 128>}, {transform_indices = @transform_1, window_bounds = array<i64: 8, 128>}, {transform_indices = @transform_2, window_bounds = array<i64: 8, 128>}, {pipeline_mode = #tpu.pipeline_mode<synchronous>, transform_indices = @transform_3, window_bounds = array<i64: 128, 4>}, {transform_indices = @transform_4, window_bounds = array<i64: 1, 1, 1>}]} {
    %c0_i32 = arith.constant 0 : i32
    %0 = arith.cmpi eq, %arg1, %c0_i32 : i32
    %1 = arith.extui %0 : i1 to i32
    %c0_i32_0 = arith.constant 0 : i32
    %2 = arith.cmpi ne, %1, %c0_i32_0 : i32
    scf.if %2 {
      %cst_19 = arith.constant 0.000000e+00 : f32
      %32 = vector.broadcast %cst_19 : f32 to vector<8x4xf32>
      %c0_20 = arith.constant 0 : index
      %c0_21 = arith.constant 0 : index
      %33 = vector.load %arg7[%c0_20, %c0_21] : memref<8x4xf32, #tpu.memory_space<vmem>>, vector<8x4xf32>
      tpu.vector_store %arg7[%c0_20, %c0_21], %32 {strides = array<i32>} : memref<8x4xf32, #tpu.memory_space<vmem>>, vector<8x4xf32>,
    } else {
    }
    %c0 = arith.constant 0 : index
    %c0_1 = arith.constant 0 : index
    %3 = vector.load %arg2[%c0, %c0_1] : memref<8x128xf32, #tpu.memory_space<vmem>>, vector<8x128xf32>
    %c0_2 = arith.constant 0 : index
    %c0_3 = arith.constant 0 : index
    %4 = vector.load %arg3[%c0_2, %c0_3] : memref<8x128xf32, #tpu.memory_space<vmem>>, vector<8x128xf32>
    %c0_4 = arith.constant 0 : index
    %c0_5 = arith.constant 0 : index
    %5 = vector.load %arg4[%c0_4, %c0_5] : memref<8x128xf32, #tpu.memory_space<vmem>>, vector<8x128xf32>
    %c0_6 = arith.constant 0 : index
    %c0_7 = arith.constant 0 : index
    %6 = vector.load %arg5[%c0_6, %c0_7] : memref<128x4xf32, #tpu.memory_space<vmem>>, vector<128x4xf32>
    %7 = arith.subf %3, %4 : vector<8x128xf32>
    %cst = arith.constant 9.99999997E-7 : f32
    %8 = vector.broadcast %cst : f32 to vector<8x128xf32>
    %9 = arith.addf %7, %8 : vector<8x128xf32>
    %10 = arith.mulf %9, %9 : vector<8x128xf32>
    %11 = arith.subf %3, %5 : vector<8x128xf32>
    %cst_8 = arith.constant 9.99999997E-7 : f32
    %12 = vector.broadcast %cst_8 : f32 to vector<8x128xf32>
    %13 = arith.addf %11, %12 : vector<8x128xf32>
    %14 = arith.mulf %13, %13 : vector<8x128xf32>
    %cst_9 = arith.constant dense<0.000000e+00> : vector<8x4xf32>
    %15 = tpu.matmul %10, %6, %cst_9 {dimension_numbers = #tpu.dot_dimension_numbers<[1], [0], [0], [1], [0, 0, 1, 1], [], []>} : vector<8x128xf32>, vector<128x4xf32>, vector<8x4xf32> -> vector<8x4xf32>
    %cst_10 = arith.constant dense<0.000000e+00> : vector<8x4xf32>
    %16 = tpu.matmul %14, %6, %cst_10 {dimension_numbers = #tpu.dot_dimension_numbers<[1], [0], [0], [1], [0, 0, 1, 1], [], []>} : vector<8x128xf32>, vector<128x4xf32>, vector<8x4xf32> -> vector<8x4xf32>
    %17 = tpu.concatenate %15, %16 in 1 : vector<8x4xf32>, vector<8x4xf32> -> vector<8x8xf32>
    %18 = math.sqrt %17 : vector<8x8xf32>
    %19 = vector.extract_strided_slice %18 {offsets = [0, 0], sizes = [8, 4], strides = [1, 1]} : vector<8x8xf32> to vector<8x4xf32>
    %cst_11 = arith.constant 1.000000e+00 : f32
    %20 = vector.broadcast %cst_11 : f32 to vector<8x4xf32>
    %21 = arith.addf %20, %19 : vector<8x4xf32>
    %22 = vector.extract_strided_slice %18 {offsets = [0, 4], sizes = [8, 4], strides = [1, 1]} : vector<8x8xf32> to vector<8x4xf32>
    %23 = arith.subf %21, %22 : vector<8x4xf32>
    %cst_12 = arith.constant 0.000000e+00 : f32
    %24 = vector.broadcast %cst_12 : f32 to vector<8x4xf32>
    %25 = arith.maximumf %23, %24 : vector<8x4xf32>
    %c0_13 = arith.constant 0 : index
    %c0_14 = arith.constant 0 : index
    %26 = vector.load %arg7[%c0_13, %c0_14] : memref<8x4xf32, #tpu.memory_space<vmem>>, vector<8x4xf32>
    %27 = arith.addf %26, %25 : vector<8x4xf32>
    %c0_15 = arith.constant 0 : index
    %c0_16 = arith.constant 0 : index
    %28 = vector.load %arg7[%c0_15, %c0_16] : memref<8x4xf32, #tpu.memory_space<vmem>>, vector<8x4xf32>
    tpu.vector_store %arg7[%c0_15, %c0_16], %27 {strides = array<i32>} : memref<8x4xf32, #tpu.memory_space<vmem>>, vector<8x4xf32>,
    %c0_i32_17 = arith.constant 0 : i32
    %29 = arith.cmpi eq, %arg1, %c0_i32_17 : i32
    %30 = arith.extui %29 : i1 to i32
    %c0_i32_18 = arith.constant 0 : i32
    %31 = arith.cmpi ne, %30, %c0_i32_18 : i32
    scf.if %31 {
      %c0_19 = arith.constant 0 : index
      %c0_20 = arith.constant 0 : index
      %32 = vector.load %arg7[%c0_19, %c0_20] : memref<8x4xf32, #tpu.memory_space<vmem>>, vector<8x4xf32>
      %33 = vector.shape_cast %32 : vector<8x4xf32> to vector<1x8x4xf32>
      %cst_21 = arith.constant dense<0.000000e+00> : vector<1xf32>
      %34 = vector.multi_reduction <add>, %33, %cst_21 [1, 2] : vector<1x8x4xf32> to vector<1xf32>
      %35 = vector.shape_cast %34 : vector<1xf32> to vector<1x1x1xf32>
      %36 = vector.extract %35[0, 0, 0] : f32 from vector<1x1x1xf32>
      %37 = vector.broadcast %36 : f32 to vector<1x1xf32>
      %38 = vector.shape_cast %37 : vector<1x1xf32> to vector<1x1x1xf32>
      %c0_22 = arith.constant 0 : index
      %c0_23 = arith.constant 0 : index
      %c0_24 = arith.constant 0 : index
      %39 = vector.load %arg6[%c0_22, %c0_23, %c0_24] : memref<1x1x1xf32, #tpu.memory_space<vmem>>, vector<1x1x1xf32>
      tpu.vector_store %arg6[%c0_22, %c0_23, %c0_24], %38 {strides = array<i32>} : memref<1x1x1xf32, #tpu.memory_space<vmem>>, vector<1x1x1xf32>,
    } else {
    }
    return
  }
  func.func @transform_0(%arg0: i32, %arg1: i32) -> (i32, i32) {
    %c1_i32 = arith.constant 1 : i32
    %0 = arith.muli %arg0, %c1_i32 : i32
    %1 = arith.addi %0, %arg1 : i32
    %c0_i32 = arith.constant 0 : i32
    %c0_i32_0 = arith.constant 0 : i32
    return %1, %c0_i32 : i32, i32
  }
  func.func @transform_1(%arg0: i32, %arg1: i32) -> (i32, i32) {
    %c1_i32 = arith.constant 1 : i32
    %0 = arith.muli %arg0, %c1_i32 : i32
    %1 = arith.addi %0, %arg1 : i32
    %c0_i32 = arith.constant 0 : i32
    %c0_i32_0 = arith.constant 0 : i32
    return %1, %c0_i32 : i32, i32
  }
  func.func @transform_2(%arg0: i32, %arg1: i32) -> (i32, i32) {
    %c1_i32 = arith.constant 1 : i32
    %0 = arith.muli %arg0, %c1_i32 : i32
    %1 = arith.addi %0, %arg1 : i32
    %c0_i32 = arith.constant 0 : i32
    %c0_i32_0 = arith.constant 0 : i32
    return %1, %c0_i32 : i32, i32
  }
  func.func @transform_3(%arg0: i32, %arg1: i32) -> (i32, i32) {
    %c0_i32 = arith.constant 0 : i32
    %c0_i32_0 = arith.constant 0 : i32
    %c0_i32_1 = arith.constant 0 : i32
    return %c0_i32, %c0_i32_0 : i32, i32
  }
  func.func @transform_4(%arg0: i32, %arg1: i32) -> (i32, i32, i32) {
    %c0_i32 = arith.constant 0 : i32
    %c0_i32_0 = arith.constant 0 : i32
    %c0_i32_1 = arith.constant 0 : i32
    return %arg0, %c0_i32, %c0_i32_0 : i32, i32, i32
  }
}

</mosaic_0001>

<bundles_post_ra>
// kernel: tpu_custom_call.1
= control target key start
LH: loop header
LB: loop body
LE: loop exit
PB: predicated region body
PF: predicated region fallthrough
CT: control target
= control target key end

     0   :  { %v447_v1 = vmov 0.0   ;;  %vm448_vm0 = vmmov 0   ;;  %s578_s0 = inlined_call_operand.vmem [shape: f32[8,128], index: 0, kind: input, shape index: {}]   ;;  %s579_s1 = inlined_call_operand.vmem [shape: f32[8,128], index: 1, kind: input, shape index: {}]   ;;  %s580_s2 = inlined_call_operand.vmem [shape: f32[8,128], index: 2, kind: input, shape index: {}]   ;;  %s581_s3 = inlined_call_operand.vmem [shape: f32[128,4], index: 3, kind: input, shape index: {}]   ;;  %s582_s4 = inlined_call_operand.hbm [shape: f32[1,1,1], index: 4, kind: output, shape index: {}]  }
   0x1   :  { %v93_v0 = vld [vmem:[%s581_s3 + $0x78] sm:$0xff]  ;;  %381 = vmatprep.subr.mxu1 %v447_v1  ;;  %v92_v2 = vld [vmem:[%s581_s3 + $0x70] sm:$0xff]  ;;  %413 = vmatprep.mubr.msk.f32.mxu1 %vm448_vm0, %v447_v1  ;;  %v91_v3 = vld [vmem:[%s581_s3 + $0x68] sm:$0xff] }
   0x2   :  { %382 = vmatpush3.msra.mxu1 %v93_v0  ;;  %346 = vmatprep.subr.mxu0 %v447_v1  ;;  %v90_v4 = vld [vmem:[%s581_s3 + $0x60] sm:$0xff] }
   0x3   :  { %383 = vmatprep.subr.mxu1 %v447_v1  ;;  %347 = vmatpush3.msra.mxu0 %v93_v0 }
   0x4   :  { %384 = vmatpush3.msra.mxu1 %v92_v2  ;;  %348 = vmatprep.subr.mxu0 %v447_v1 }
   0x5   :  { %385 = vmatprep.subr.mxu1 %v447_v1  ;;  %349 = vmatpush3.msra.mxu0 %v92_v2 }
   0x6   :  { %386 = vmatpush3.msra.mxu1 %v91_v3  ;;  %350 = vmatprep.subr.mxu0 %v447_v1 }
   0x7   :  { %9 = vsyncpa [#allocation4], 0  ;;  %387 = vmatprep.subr.mxu1 %v447_v1  ;;  %v89_v5 = vld [vmem:[%s581_s3 + $0x58] sm:$0xff]  ;;  %351 = vmatpush3.msra.mxu0 %v91_v3  ;;  %v88_v6 = vld [vmem:[%s581_s3 + $0x50] sm:$0xff]  ;;  %vm73_vm1 = vcmask 31744   ;;  %s450_s24 = smov 124  }
   0x8   :  { %388 = vmatpush3.msra.mxu1 %v90_v4  ;;  %352 = vmatprep.subr.mxu0 %v447_v1  ;;  %v87_v7 = vld [vmem:[%s581_s3 + $0x48] sm:$0xff]  ;;  %v86_v8 = vld [vmem:[%s581_s3 + $0x40] sm:$0xff]  ;;  %v85_v9 = vld [vmem:[%s581_s3 + $0x38] sm:$0xff]  ;;  %74 = vst.msk [vmem:[#allocation2] sm:$0xff] %vm73_vm1, %v447_v1  ;;  %s451_s25 = smov [#allocation3]   ;;  %vm278_vm4 = vcmask 0  }
   0x9   :  { %389 = vmatprep.subr.mxu1 %v447_v1  ;;  %353 = vmatpush3.msra.mxu0 %v90_v4  ;;  %v84_v10 = vld [vmem:[%s581_s3 + $0x30] sm:$0xff]  ;;  %v75_v11 = vld [vmem:[%s578_s0] sm:$0xff]  ;;  %v83_v13 = vld [vmem:[%s581_s3 + $0x28] sm:$0xff]  ;;  %s286_s26 = sshll.u32 %s451_s25, 4  ;;  %s287_s26 = int_to_ptr.vmem [resolvable:$true] %s286_s26 }
   0xa   :  { %390 = vmatpush3.msra.mxu1 %v89_v5  ;;  %354 = vmatprep.subr.mxu0 %v447_v1  ;;  %v77_v12 = vld [vmem:[%s580_s2] sm:$0xff]  ;;  %v81_v17 = vld [vmem:[%s581_s3 + $0x18] sm:$0xff]  ;;  %v80_v19 = vld [vmem:[%s581_s3 + $0x10] sm:$0xff]  ;;  %s425_s28 = scalar_lea.vmem %s287_s26, 16  ;;  %s429_s29 = scalar_lea.vmem %s287_s26, 32 }
   0xb   :  { %391 = vmatprep.subr.mxu1 %v447_v1  ;;  %355 = vmatpush3.msra.mxu0 %v89_v5  ;;  %v76_v14 = vld [vmem:[%s579_s1] sm:$0xff]  ;;  %v97_v16 = vsub.f32 %v75_v11, %v77_v12  ;;  %v79_v21 = vld [vmem:[%s581_s3 + $0x8] sm:$0xff]  ;;  %p426_p0 = scmp.ne.s32.totalorder %s287_s26, %s425_s28  ;;  %p430_p1 = scmp.lt.s32.totalorder %s287_s26, %s287_s26 }
   0xc   :  { %392 = vmatpush3.msra.mxu1 %v88_v6  ;;  %356 = vmatprep.subr.mxu0 %v447_v1  ;;  %v82_v15 = vld [vmem:[%s581_s3 + $0x20] sm:$0xff]  ;;  %v94_v18 = vsub.f32 %v75_v11, %v76_v14  ;;  %p431_p2 = scmp.lt.s32.totalorder %s429_s29, %s425_s28 }
   0xd   :  { %393 = vmatprep.subr.mxu1 %v447_v1  ;;  %357 = vmatpush3.msra.mxu0 %v88_v6  ;;  %v98_v20 = vadd.f32 1e-06, %v97_v16  ;;  %v78_v23 = vld [vmem:[%s581_s3] sm:$0xff]  ;;  %s449_s3 = smov 4  }
   0xe   :  { %394 = vmatpush3.msra.mxu1 %v87_v7  ;;  %358 = vmatprep.subr.mxu0 %v447_v1  ;;  %v95_v22 = vadd.f32 1e-06, %v94_v18  ;;  %p432_p3 = por %p431_p2, %p430_p1 }
   0xf   :  { %395 = vmatprep.subr.mxu1 %v447_v1  ;;  %359 = vmatpush3.msra.mxu0 %v87_v7  ;;  %v99_v24 = vmul.f32 %v98_v20, %v98_v20  ;;  %v260_v40 = vld [vmem:[#allocation2] sm:$0xff] }
  0x10   :  { %396 = vmatpush3.msra.mxu1 %v86_v8  ;;  %360 = vmatprep.subr.mxu0 %v447_v1  ;;  %v96_v25 = vmul.f32 %v95_v22, %v95_v22  ;;  %p433_p4 = pnand %p432_p3, %p426_p0 }
  0x11   :  { %397 = vmatprep.subr.mxu1 %v447_v1  ;;  %361 = vmatpush3.msra.mxu0 %v86_v8 }
  0x12   :  { %398 = vmatpush3.msra.mxu1 %v85_v9  ;;  %362 = vmatprep.subr.mxu0 %v447_v1 }
  0x13   :  { %399 = vmatprep.subr.mxu1 %v447_v1  ;;  %363 = vmatpush3.msra.mxu0 %v85_v9 }
  0x14   :  { %400 = vmatpush3.msra.mxu1 %v84_v10  ;;  %364 = vmatprep.subr.mxu0 %v447_v1 }
  0x15   :  { %401 = vmatprep.subr.mxu1 %v447_v1  ;;  %365 = vmatpush3.msra.mxu0 %v84_v10 }
  0x16   :  { %402 = vmatpush3.msra.mxu1 %v83_v13  ;;  %366 = vmatprep.subr.mxu0 %v447_v1 }
  0x17   :  { %403 = vmatprep.subr.mxu1 %v447_v1  ;;  %367 = vmatpush3.msra.mxu0 %v83_v13 }
  0x18   :  { %404 = vmatpush3.msra.mxu1 %v82_v15  ;;  %368 = vmatprep.subr.mxu0 %v447_v1 }
  0x19   :  { %405 = vmatprep.subr.mxu1 %v447_v1  ;;  %369 = vmatpush3.msra.mxu0 %v82_v15 }
  0x1a   :  { %406 = vmatpush3.msra.mxu1 %v81_v17  ;;  %370 = vmatprep.subr.mxu0 %v447_v1 }
  0x1b   :  { %407 = vmatprep.subr.mxu1 %v447_v1  ;;  %371 = vmatpush3.msra.mxu0 %v81_v17 }
  0x1c   :  { %408 = vmatpush3.msra.mxu1 %v80_v19  ;;  %372 = vmatprep.subr.mxu0 %v447_v1 }
  0x1d   :  { %409 = vmatprep.subr.mxu1 %v447_v1  ;;  %373 = vmatpush3.msra.mxu0 %v80_v19 }
  0x1e   :  { %410 = vmatpush3.msra.mxu1 %v79_v21  ;;  %374 = vmatprep.subr.mxu0 %v447_v1 }
  0x1f   :  { %411 = vmatprep.subr.mxu1 %v447_v1  ;;  %375 = vmatpush3.msra.mxu0 %v79_v21 }
  0x20   :  { %412 = vmatpush3.msra.mxu1 %v78_v23  ;;  %376 = vmatprep.subr.mxu0 %v447_v1 }
  0x21   :  { %414 = vmatmul.mubr.f32.vlgmr.msra.gmra.mxu1 %v99_v24  ;;  %377 = vmatpush3.msra.mxu0 %v78_v23 }
  0x22   :  { %378 = vmatprep.mubr.msk.f32.mxu0 %vm448_vm0, %v447_v1 }
  0x23   :  { %379 = vmatmul.mubr.f32.vlgmr.msra.gmra.mxu0 %v96_v25 }
  0xe1   :  { %v236_v26 = vpop.f32.mrf.mxu1 }
  0xe2   :  { %241 = vrot.lane.b32.xlu0 %v236_v26, %s449_s3 }
  0xe3   :  { %v415_v27 = vpop.f32.mrf.mxu1  ;;  %v166_v28 = vpop.f32.mrf.mxu0 }
  0xe5   :  { %v380_v29 = vpop.f32.mrf.mxu0 }
 0x154   :  { %v242_v30 = vpop.permute.xlu0 %241 }
 0x155   :  { %v245_v31 = vsel %vm73_vm1, %v166_v28, %v242_v30 }
 0x156   :  { %423 = vrsqrt.f32 %v245_v31  ;;  %vm248_vm2 = vcmp.eq.f32.partialorder %v245_v31, inf  ;;  %v251_v34 = vand.u32 2147483648, %v245_v31  ;;  %vm250_vm3 = vcmp.eq.f32.partialorder %v245_v31, 0.0 }
 0x163   :  { %v424_v32 = vpop.eup %423 }
 0x164   :  { %v247_v33 = vmul.f32 %v424_v32, %v245_v31 }
 0x166   :  { %v249_v35 = vsel %vm248_vm2, %v245_v31, %v247_v33 }
 0x167   :  { %v252_v36 = vsel %vm250_vm3, %v251_v34, %v249_v35 }
 0x168   :  { %255 = vrot.lane.b32.xlu0 %v252_v36, %s450_s24  ;;  %v253_v37 = vadd.f32 1.0, %v252_v36 }
 0x1da   :  { %v256_v38 = vpop.permute.xlu0 %255 }
 0x1db   :  { %v258_v39 = vsub.f32 %v253_v37, %v256_v38 }
 0x1dd   :  { %v259_v41 = vmax.f32 %v258_v39, 0.0 }
 0x1df   :  { %v261_v42 = vadd.f32 %v260_v40, %v259_v41 }
 0x1e1   :  { %262 = vst.msk [vmem:[#allocation2] sm:$0xff] %vm73_vm1, %v261_v42 }
 0x1e8   :  { %v266_v43 = vld [vmem:[#allocation2] sm:$0xff] }
 0x1e9   :  { %v267_v44 = vsel %vm73_vm1, %v266_v43, 0.0 }
 0x1ea   :  { %268 = vadd.xlane.f32.xlu1 %v267_v44 }
 0x273   :  { %v269_v45 = vpop.xlane.xlu1 %268 }
 0x274   :  { %v270_v46 = vrot.slane %v269_v45, 4 }
 0x276   :  { %v271_v47 = vadd.f32 %v270_v46, %v269_v45 }
 0x278   :  { %v272_v48 = vrot.slane %v271_v47, 2 }
 0x27a   :  { %v273_v49 = vadd.f32 %v272_v48, %v271_v47 }
 0x27c   :  { %v274_v50 = vrot.slane %v273_v49, 1 }
 0x27e   :  { %v275_v51 = vadd.f32 %v274_v50, %v273_v49 }
 0x280   :  { %416 = vpush %v275_v51 }
 0x2b1   :  { %s417_s27 = spop %416 }
 0x2b2   :  { %v277_v52 = vstv %s417_s27 }
 0x2b3   :  { %279 = vst.msk [vmem:[#allocation3] sm:$0x1] %vm278_vm4, %v277_v52 }
 0x2b4   :  { %436 = shalt.err (!%p433_p4)
}
 0x2b5   :  { %289 = dma.vmem_to_hbm [thread:$0]  %s287_s26, 16, %s582_s4, [#allocation4]  }
 0x2b6   :  { %445 = dma.done.wait [#allocation4], 16  }
 0x2b7   :  { %446 = vsyncadd [#allocation4], 4294967280 }
 0x2b8   :  { %293 = vsyncpa [#allocation4], 1 }

</bundles_post_ra>
